<compile_context>
chip_gen: v6e
topology: v6e:2x2x1
jax: 0.10.0
libtpu: 0.0.40
codegen_flags: <defaults>
</compile_context>

<pallas_src>
import functools

import jax
import jax.numpy as jnp
from jax.experimental import pallas as pl
from jax.experimental.pallas import tpu as pltpu


def _round_up(x, m):
    return (x + m - 1) // m * m


def _choose_spatial_tile(HW, tile_cap, bytes_per_lane):
    """Pick a 128-multiple lane tile minimizing padded traffic + step overhead."""
    hwp128 = _round_up(HW, 128)
    tile_cap = max(128, min(_round_up(int(tile_cap), 128), hwp128))
    # Per-grid-step overhead (~0.35 us) expressed as equivalent lanes of HBM
    # traffic (~1 TB/s representative), so padding waste and step count trade
    # off in a single unit.
    overhead_lanes = max(256, int(350e3 / max(bytes_per_lane, 1)))
    best = None
    for t in range(128, tile_cap + 1, 128):
        hwp = _round_up(HW, t)
        steps = hwp // t
        cost = hwp + steps * overhead_lanes
        if best is None or cost < best[0] or (cost == best[0] and t > best[1]):
            best = (cost, t, hwp)
    return best[1], best[2]


def ffn_kernel(x_ref, w1_ref, b1_ref, w2_ref, b2_ref, o_ref, *, compute_dtype):
    # x_ref : (Nb, ed, T)   w1_ref: (h, ed)   b1_ref: (h, 1)  [f32]
    # w2_ref: (ed, h)       b2_ref: (ed, 1)   [f32]           o_ref: (Nb, ed, T)
    w1 = w1_ref[...]
    w2 = w2_ref[...]
    b1 = b1_ref[...]
    b2 = b2_ref[...]
    for b in range(x_ref.shape[0]):            # Nb is small & static -> unrolled
        x = x_ref[b].astype(compute_dtype)     # (ed, T)
        # pw1 (1x1 conv; BN scale pre-folded into w1) + BN bias + ReLU (f32).
        hdn = jnp.dot(w1, x, preferred_element_type=jnp.float32)      # (h, T)
        hdn = jnp.maximum(hdn + b1, 0.0)
        # pw2 (1x1 conv; BN scale pre-folded into w2) + BN bias (f32 epilogue).
        y = jnp.dot(w2, hdn.astype(compute_dtype),
                    preferred_element_type=jnp.float32)               # (ed, T)
        o_ref[b] = (y + b2).astype(o_ref.dtype)


@functools.partial(jax.jit,
                   static_argnames=("tile_hw", "compute_dtype", "out_dtype"))
def ffn_forward(x_nchw, w1, s1, b1, w2, s2, b2, *,
                tile_hw=4096, compute_dtype=jnp.bfloat16, out_dtype=None):
    """x_nchw: (N, ed, H, W). w1: (ed, h), w2: (h, ed); s*, b*: folded BN."""
    N, ed, H, W = x_nchw.shape
    h = w1.shape[1]
    HW = H * W
    x_dtype = x_nchw.dtype
    out_dtype = jnp.dtype(x_dtype if out_dtype is None else out_dtype)
    compute_dtype = jnp.dtype(compute_dtype)
    x_item = jnp.dtype(x_dtype).itemsize
    out_item = out_dtype.itemsize
    w_item = compute_dtype.itemsize

    # Fold BN scales into the conv weights in f32, then cast to compute dtype.
    w1t = (w1.astype(jnp.float32).T
           * s1.astype(jnp.float32)[:, None]).astype(compute_dtype)   # (h, ed)
    w2t = (w2.astype(jnp.float32).T
           * s2.astype(jnp.float32)[:, None]).astype(compute_dtype)   # (ed, h)
    b1c = b1.reshape(h, 1).astype(jnp.float32)
    b2c = b2.reshape(ed, 1).astype(jnp.float32)

    # ---- Block-size selection (trace-time Python on static shapes) ----
    # Spatial (lane) tile: minimize padded HBM traffic + per-step overhead.
    tile, HWp = _choose_spatial_tile(HW, tile_hw, ed * (x_item + out_item))

    # Batch block: grow per-step payload when ed / HW are small.
    divisors = [d for d in range(1, N + 1) if N % d == 0]
    payload_target = 2 * 1024 * 1024
    Nb = 1
    for d in divisors:
        if d * ed * tile * x_item <= payload_target:
            Nb = d

    # Chip-aware VMEM budget (~72% of per-core capacity); clamp block sizes
    # so the double-buffered footprint fits rather than capping the limit.
    try:
        vmem_cap = int(pltpu.get_tpu_info().vmem_capacity_bytes)
    except Exception:
        vmem_cap = 64 * 1024 * 1024        # v7x-safe fallback
    vmem_budget = int(0.72 * vmem_cap)

    def footprint(nb, t):
        io = 2 * nb * ed * t * (x_item + out_item)        # double-buffered x/out
        wts = 2 * (2 * h * ed * w_item + (h + ed) * 4)    # weights + biases
        tmp = 2 * h * t * 4 + nb * ed * t * 4             # f32 hidden + epilogue
        return io + wts + tmp

    while footprint(Nb, tile) > vmem_budget and Nb > 1:
        Nb = max(d for d in divisors if d < Nb)
    while footprint(Nb, tile) > vmem_budget and tile > 128:
        tile = max(128, _round_up(tile // 2, 128))
        HWp = _round_up(HW, tile)

    # Keep >=2 grid steps whenever possible so dual-TensorCore chips (v7x)
    # can split the grid; the extra step is negligible on single-core chips.
    if (N // Nb) * (HWp // tile) < 2:
        if Nb > 1:
            Nb = max(d for d in divisors if d < Nb)
        elif HWp // 128 >= 2:
            tile = 128 * ((HWp // 128 + 1) // 2)
            HWp = _round_up(HW, tile)

    # Channel-first layout: spatial axis maps to TPU lanes (lane-dense stores).
    x3 = x_nchw.reshape(N, ed, HW)
    if HWp != HW:
        x3 = jnp.pad(x3, ((0, 0), (0, 0), (0, HWp - HW)))

    grid = (N // Nb, HWp // tile)

    cost = pl.CostEstimate(
        flops=4 * N * HW * ed * h,
        transcendentals=0,
        bytes_accessed=(N * ed * HW * (x_item + out_item)
                        + 2 * h * ed * w_item + (h + ed) * 4))

    out3 = pl.pallas_call(
        functools.partial(ffn_kernel, compute_dtype=compute_dtype),
        out_shape=jax.ShapeDtypeStruct((N, ed, HWp), out_dtype),
        grid_spec=pltpu.PrefetchScalarGridSpec(
            num_scalar_prefetch=0,
            grid=grid,
            in_specs=[
                pl.BlockSpec((Nb, ed, tile), lambda n, j: (n, 0, j)),  # x
                pl.BlockSpec((h, ed), lambda n, j: (0, 0)),   # W1^T * s1
                pl.BlockSpec((h, 1), lambda n, j: (0, 0)),    # b1 (f32)
                pl.BlockSpec((ed, h), lambda n, j: (0, 0)),   # W2^T * s2
                pl.BlockSpec((ed, 1), lambda n, j: (0, 0)),   # b2 (f32)
            ],
            out_specs=pl.BlockSpec((Nb, ed, tile), lambda n, j: (n, 0, j)),
        ),
        compiler_params=pltpu.CompilerParams(
            dimension_semantics=("parallel", "parallel"),
            vmem_limit_bytes=vmem_budget),
        cost_estimate=cost,
    )(x3, w1t, b1c, w2t, b2c)

    if HWp != HW:
        out3 = out3[:, :, :HW]
    return out3.reshape(N, ed, H, W)


def fold_bn(gamma, beta, running_mean, running_var, eps=1e-5):
    scale = gamma / jnp.sqrt(running_var + eps)
    bias = beta - running_mean * scale
    return scale, bias


def _reference(x, w1, s1, b1, w2, s2, b2):
    N, ed, H, W = x.shape
    xm = jnp.transpose(x, (0, 2, 3, 1)).reshape(-1, ed).astype(jnp.float32)
    hdn = jnp.maximum(xm @ w1 * s1 + b1, 0.0)
    y = hdn @ w2 * s2 + b2
    return jnp.transpose(y.reshape(N, H, W, ed), (0, 3, 1, 2))


if __name__ == "__main__":
    # Small shapes consistent with the module: x is NCHW.
    N, ed, H, W = 2, 16, 16, 16
    hdim = 2 * ed  # typical EfficientViT FFN expansion

    key = jax.random.PRNGKey(0)
    ks = jax.random.split(key, 9)

    x = jax.random.normal(ks[0], (N, ed, H, W), dtype=jnp.float32)

    # Conv weights: PyTorch Conv2d weight is (out, in, 1, 1); stored as (in, out).
    w1 = jax.random.normal(ks[1], (ed, hdim), dtype=jnp.float32) * 0.1
    w2 = jax.random.normal(ks[2], (hdim, ed), dtype=jnp.float32) * 0.1

    # BatchNorm params. Note: the PyTorch __init__ sets gamma2=0 (output all
    # zeros); draw non-trivial deterministic values so the full path is
    # exercised end to end.
    g1 = 1.0 + 0.1 * jax.random.normal(ks[3], (hdim,), dtype=jnp.float32)
    be1 = 0.1 * jax.random.normal(ks[4], (hdim,), dtype=jnp.float32)
    rm1 = 0.1 * jax.random.normal(ks[5], (hdim,), dtype=jnp.float32)
    rv1 = jnp.abs(jax.random.normal(ks[6], (hdim,), dtype=jnp.float32)) + 0.5

    g2 = 0.1 * jax.random.normal(ks[7], (ed,), dtype=jnp.float32)
    be2 = 0.1 * jax.random.normal(ks[8], (ed,), dtype=jnp.float32)
    rm2 = jnp.zeros((ed,), dtype=jnp.float32)
    rv2 = jnp.ones((ed,), dtype=jnp.float32)

    s1, b1 = fold_bn(g1, be1, rm1, rv1)
    s2, b2 = fold_bn(g2, be2, rm2, rv2)

    ref = _reference(x, w1, s1, b1, w2, s2, b2)

    # Strict f32 correctness path (compute_dtype=f32).
    out_f32 = ffn_forward(x, w1, s1, b1, w2, s2, b2, compute_dtype=jnp.float32)
    jax.block_until_ready(out_f32)
    assert out_f32.shape == (N, ed, H, W)
    assert jnp.allclose(out_f32, ref, atol=1e-4, rtol=1e-4)

    # Default perf path: bf16 compute, caller dtype (f32) I/O.
    out_def = ffn_forward(x, w1, s1, b1, w2, s2, b2)
    jax.block_until_ready(out_def)
    assert out_def.dtype == jnp.float32
    assert jnp.allclose(out_def, ref, atol=5e-2, rtol=5e-2)

    # Ragged spatial size (H*W = 196, not a multiple of 128) -> padding path.
    Hr = Wr = 14
    xr = jax.random.normal(ks[0], (N, ed, Hr, Wr), dtype=jnp.float32)
    out_r = ffn_forward(xr, w1, s1, b1, w2, s2, b2, compute_dtype=jnp.float32)
    jax.block_until_ready(out_r)
    ref_r = _reference(xr, w1, s1, b1, w2, s2, b2)
    assert out_r.shape == (N, ed, Hr, Wr)
    assert jnp.allclose(out_r, ref_r, atol=1e-4, rtol=1e-4)

    # Full bf16 I/O path (recommended on v6e/v7x): bf16 activations in & out.
    out_bf16 = ffn_forward(x.astype(jnp.bfloat16), w1, s1, b1, w2, s2, b2)
    jax.block_until_ready(out_bf16)
    assert out_bf16.dtype == jnp.bfloat16
    assert jnp.allclose(out_bf16.astype(jnp.float32), ref, atol=5e-2, rtol=5e-2)

    print("KERNEL_OK")
</pallas_src>

<mosaic_0001>
module attributes {stable_mosaic.version = 11 : i64} {
  func.func @ffn_kernel(%arg0: i32, %arg1: i32, %arg2: memref<1x16x256xf32, #tpu.memory_space<vmem>>, %arg3: memref<32x16xf32, #tpu.memory_space<vmem>>, %arg4: memref<32x1xf32, #tpu.memory_space<vmem>>, %arg5: memref<16x32xf32, #tpu.memory_space<vmem>>, %arg6: memref<16x1xf32, #tpu.memory_space<vmem>>, %arg7: memref<1x16x256xf32, #tpu.memory_space<vmem>>) attributes {dimension_semantics = [#tpu.dimension_semantics<parallel>, #tpu.dimension_semantics<parallel>], iteration_bounds = array<i64: 2, 1>, scalar_prefetch = 0 : i64, scratch_operands = 0 : i64, tpu.core_type = #tpu.core_type<tc>, window_params = [{transform_indices = @transform_0, window_bounds = array<i64: 1, 16, 256>}, {pipeline_mode = #tpu.pipeline_mode<synchronous>, transform_indices = @transform_1, window_bounds = array<i64: 32, 16>}, {pipeline_mode = #tpu.pipeline_mode<synchronous>, transform_indices = @transform_2, window_bounds = array<i64: 32, 1>}, {pipeline_mode = #tpu.pipeline_mode<synchronous>, transform_indices = @transform_3, window_bounds = array<i64: 16, 32>}, {pipeline_mode = #tpu.pipeline_mode<synchronous>, transform_indices = @transform_4, window_bounds = array<i64: 16, 1>}, {transform_indices = @transform_5, window_bounds = array<i64: 1, 16, 256>}]} {
    %c0 = arith.constant 0 : index
    %c0_0 = arith.constant 0 : index
    %0 = vector.load %arg3[%c0, %c0_0] : memref<32x16xf32, #tpu.memory_space<vmem>>, vector<32x16xf32>
    %c0_1 = arith.constant 0 : index
    %c0_2 = arith.constant 0 : index
    %1 = vector.load %arg5[%c0_1, %c0_2] : memref<16x32xf32, #tpu.memory_space<vmem>>, vector<16x32xf32>
    %c0_3 = arith.constant 0 : index
    %c0_4 = arith.constant 0 : index
    %2 = vector.load %arg4[%c0_3, %c0_4] : memref<32x1xf32, #tpu.memory_space<vmem>>, vector<32x1xf32>
    %c0_5 = arith.constant 0 : index
    %c0_6 = arith.constant 0 : index
    %3 = vector.load %arg6[%c0_5, %c0_6] : memref<16x1xf32, #tpu.memory_space<vmem>>, vector<16x1xf32>
    %c0_7 = arith.constant 0 : index
    %c0_8 = arith.constant 0 : index
    %c0_9 = arith.constant 0 : index
    %4 = vector.load %arg2[%c0_7, %c0_8, %c0_9] : memref<1x16x256xf32, #tpu.memory_space<vmem>>, vector<1x16x256xf32>
    %5 = vector.shape_cast %4 : vector<1x16x256xf32> to vector<16x256xf32>
    %cst = arith.constant dense<0.000000e+00> : vector<32x256xf32>
    %6 = tpu.matmul %0, %5, %cst {dimension_numbers = #tpu.dot_dimension_numbers<[1], [0], [0], [1], [0, 0, 1, 1], [], []>} : vector<32x16xf32>, vector<16x256xf32>, vector<32x256xf32> -> vector<32x256xf32>
    %7 = vector.broadcast %2 : vector<32x1xf32> to vector<32x256xf32>
    %8 = arith.addf %6, %7 : vector<32x256xf32>
    %cst_10 = arith.constant 0.000000e+00 : f32
    %9 = vector.broadcast %cst_10 : f32 to vector<32x256xf32>
    %10 = arith.maximumf %8, %9 : vector<32x256xf32>
    %cst_11 = arith.constant dense<0.000000e+00> : vector<16x256xf32>
    %11 = tpu.matmul %1, %10, %cst_11 {dimension_numbers = #tpu.dot_dimension_numbers<[1], [0], [0], [1], [0, 0, 1, 1], [], []>} : vector<16x32xf32>, vector<32x256xf32>, vector<16x256xf32> -> vector<16x256xf32>
    %12 = vector.broadcast %3 : vector<16x1xf32> to vector<16x256xf32>
    %13 = arith.addf %11, %12 : vector<16x256xf32>
    %c0_12 = arith.constant 0 : index
    %c0_13 = arith.constant 0 : index
    %c0_14 = arith.constant 0 : index
    %14 = vector.load %arg7[%c0_12, %c0_13, %c0_14] : memref<1x16x256xf32, #tpu.memory_space<vmem>>, vector<1x16x256xf32>
    %15 = vector.shape_cast %14 : vector<1x16x256xf32> to vector<16x256xf32>
    %16 = vector.shape_cast %13 : vector<16x256xf32> to vector<1x16x256xf32>
    tpu.vector_store %arg7[%c0_12, %c0_13, %c0_14], %16 {strides = array<i32>} : memref<1x16x256xf32, #tpu.memory_space<vmem>>, vector<1x16x256xf32>,
    return
  }
  func.func @transform_0(%arg0: i32, %arg1: i32) -> (i32, i32, i32) {
    %c0_i32 = arith.constant 0 : i32
    %c0_i32_0 = arith.constant 0 : i32
    return %arg0, %c0_i32, %arg1 : i32, i32, i32
  }
  func.func @transform_1(%arg0: i32, %arg1: i32) -> (i32, i32) {
    %c0_i32 = arith.constant 0 : i32
    %c0_i32_0 = arith.constant 0 : i32
    %c0_i32_1 = arith.constant 0 : i32
    return %c0_i32, %c0_i32_0 : i32, i32
  }
  func.func @transform_2(%arg0: i32, %arg1: i32) -> (i32, i32) {
    %c0_i32 = arith.constant 0 : i32
    %c0_i32_0 = arith.constant 0 : i32
    %c0_i32_1 = arith.constant 0 : i32
    return %c0_i32, %c0_i32_0 : i32, i32
  }
  func.func @transform_3(%arg0: i32, %arg1: i32) -> (i32, i32) {
    %c0_i32 = arith.constant 0 : i32
    %c0_i32_0 = arith.constant 0 : i32
    %c0_i32_1 = arith.constant 0 : i32
    return %c0_i32, %c0_i32_0 : i32, i32
  }
  func.func @transform_4(%arg0: i32, %arg1: i32) -> (i32, i32) {
    %c0_i32 = arith.constant 0 : i32
    %c0_i32_0 = arith.constant 0 : i32
    %c0_i32_1 = arith.constant 0 : i32
    return %c0_i32, %c0_i32_0 : i32, i32
  }
  func.func @transform_5(%arg0: i32, %arg1: i32) -> (i32, i32, i32) {
    %c0_i32 = arith.constant 0 : i32
    %c0_i32_0 = arith.constant 0 : i32
    return %arg0, %c0_i32, %arg1 : i32, i32, i32
  }
}

</mosaic_0001>

<bundles_post_ra>
// kernel: ffn_forward.1
= control target key start
LH: loop header
LB: loop body
LE: loop exit
PB: predicated region body
PF: predicated region fallthrough
CT: control target
= control target key end

     0   :  { %s698_s18 = smov 0   ;;  %s700_s19 = smov 0   ;;  %s784_s0 = inlined_call_operand.vmem [shape: f32[2,16,256], index: 0, kind: input, shape index: {}]   ;;  %s785_s1 = inlined_call_operand.vmem [shape: f32[32,16], index: 1, kind: input, shape index: {}]   ;;  %s786_s2 = inlined_call_operand.vmem [shape: f32[32,1], index: 2, kind: input, shape index: {}]   ;;  %s787_s3 = inlined_call_operand.vmem [shape: f32[16,32], index: 3, kind: input, shape index: {}]   ;;  %s788_s4 = inlined_call_operand.vmem [shape: f32[16,1], index: 4, kind: input, shape index: {}]   ;;  %s789_s5 = inlined_call_operand.vmem [shape: f32[2,16,256], index: 5, kind: output, shape index: {}]  }
   0x1   :  { %s702_s20 = smov 0  }
   0x2 LB: > { %s27_s21 = sadd.s32 1, %s660_s19  ;;  %p599_p0 = scmp.ge.s32.totalorder %s664_s20, 1  ;;  %s664_s20 = sphi %s702_s20, %s15_s20   ;;  %s660_s19 = sphi %s700_s19, %s791_s19   ;;  %s656_s18 = sphi %s698_s18, %s790_s18  }
   0x3   : > { %p29_p1 = scmp.ge.s32.totalorder %s27_s21, 2  ;;  %p208_p2 = scmp.lt.s32.totalorder %s664_s20, 3 }
   0x5   : > { %s793_s21 = smov (%p29_p1, %s27_s21), 0  ;;  %p209_p3 = pnand %p599_p0, %p208_p2 }
   0x6   : > { %p245_p4 = scmp.lt.s32.totalorder (!%p209_p3), %s656_s18, 1 }
   0x7   : > { %212 = sbr.rel (%p209_p3) target bundleno = 442 (0x1ba), region = 40 }
   0xc   : > { %v666_v0 = vmov 0.0   ;;  %v271_v1 = vld [vmem:[%s786_s2 + $0x8] sm:$0xff]  ;;  %s795_s18 = smov (!%p245_p4, %s656_s18), 1  ;;  %v667_v2 = vmov 0   ;;  %v273_v3 = vld [vmem:[%s786_s2 + $0x18] sm:$0xff]  ;;  %v270_v4 = vld [vmem:[%s786_s2] sm:$0xff] }
   0xd   : > { %377 = vmatprep.mubr.f32.mxu0 %v666_v0  ;;  %491 = vmatprep.mubr.f32.mxu1 %v666_v0  ;;  %s612_s26 = sshll.u32 %s795_s18, 5  ;;  %v272_v5 = vld [vmem:[%s786_s2 + $0x10] sm:$0xff]  ;;  %v264_v10 = vld [vmem:[%s785_s1] sm:$0xff]  ;;  %vm300_vm0 = vcmask 130048   ;;  %v275_v11 = vld [vmem:[%s788_s4 + $0x8] sm:$0xff]  ;;  %vm420_vm1 = vcmask 261120  }
   0xe   : > { %641 = vset.pattern.permute.xlu1 %v667_v2  ;;  %640 = vset.pattern.permute.xlu0 %v667_v2  ;;  %s252_s6 = scalar_lea.vmem %s784_s0, %s612_s26  ;;  %v274_v12 = vld [vmem:[%s788_s4] sm:$0xff]  ;;  %v265_v13 = vld [vmem:[%s785_s1 + $0x8] sm:$0xff]  ;;  %v266_v14 = vld [vmem:[%s785_s1 + $0x10] sm:$0xff]  ;;  %s262_s7 = scalar_lea.vmem %s789_s5, %s612_s26 }
   0xf   : > { %287 = vperm.xlu1 %641, %v271_v1   ;;  %297 = vperm.xlu0 %640, %v273_v3   ;;  %v279_v6 = vld [vmem:[%s252_s6 + $0x18] sm:$0xff]  ;;  %v278_v7 = vld [vmem:[%s252_s6 + $0x10] sm:$0xff]  ;;  %v277_v8 = vld [vmem:[%s252_s6 + $0x8] sm:$0xff] }
  0x10   : > { %341 = vmatprep.subr.mxu0 %v279_v6  ;;  %v276_v9 = vld [vmem:[%s252_s6] sm:$0xff]  ;;  %v267_v15 = vld [vmem:[%s785_s1 + $0x18] sm:$0xff]  ;;  %v269_v45 = vld [vmem:[%s787_s3 + $0x8] sm:$0xff] }
  0x11   : > { %342 = vmatpush1.msra.mxu0 %v278_v7  ;;  %v268_v44 = vld [vmem:[%s787_s3] sm:$0xff] }
  0x12   : > { %343 = vmatprep.subr.mxu0 %v277_v8 }
  0x13   : > { %282 = vperm.xlu1 %641, %v270_v4   ;;  %292 = vperm.xlu0 %640, %v272_v5  }
  0x14   : > { %344 = vmatpush1.msra.mxu0 %v276_v9 }
  0x15   : > { %604 = vmatmul.mubr.msk.f32.vlgmr.msra.gmra.mxu0 %vm300_vm0, %v264_v10 }
  0x16   : > { %383 = vmatprep.mubr.f32.mxu0 %v666_v0 }
  0x17   : > { %417 = vperm.xlu1 %641, %v275_v11   ;;  %412 = vperm.xlu0 %640, %v274_v12  }
  0x19   : > { %605 = vmatmul.mubr.msk.f32.gmra.mxu0 %vm300_vm0, %v265_v13 }
  0x1a   : > { %389 = vmatprep.mubr.f32.mxu0 %v666_v0 }
  0x1d   : > { %606 = vmatmul.mubr.msk.f32.gmra.mxu0 %vm300_vm0, %v266_v14 }
  0x1e   : > { %395 = vmatprep.mubr.f32.mxu0 %v666_v0 }
  0x21   : > { %607 = vmatmul.mubr.msk.f32.gmra.mxu0 %vm300_vm0, %v267_v15 }
  0x8a   : > { %v298_v20 = vpop.permute.xlu0 %297  ;;  %v288_v23 = vpop.permute.xlu1 %287 }
  0x8e   : > { %v293_v25 = vpop.permute.xlu0 %292  ;;  %v283_v31 = vpop.permute.xlu1 %282 }
  0x92   : > { %v413_v46 = vpop.permute.xlu0 %412  ;;  %v418_v51 = vpop.permute.xlu1 %417 }
  0xd5   : > { %v379_v16 = vpop.f32.mrf.mxu0 }
  0xd6   : > { %v380_v38 = vadd.f32 %v379_v16, %v283_v31 }
  0xd7   : > { %v381_v17 = vpop.f32.mrf.mxu0 }
  0xd8   : > { %v382_v36 = vadd.f32 %v381_v17, %v283_v31  ;;  %v402_v43 = vmax.f32 %v380_v38, 0.0 }
  0xd9   : > { %v385_v18 = vpop.f32.mrf.mxu0 }
  0xda   : > { %v386_v34 = vadd.f32 %v385_v18, %v288_v23  ;;  %v403_v42 = vmax.f32 %v382_v36, 0.0 }
  0xdb   : > { %v387_v19 = vpop.f32.mrf.mxu0 }
  0xdc   : > { %v388_v32 = vadd.f32 %v387_v19, %v288_v23  ;;  %v404_v41 = vmax.f32 %v386_v34, 0.0 }
  0xdd   : > { %v391_v21 = vpop.f32.mrf.mxu0 }
  0xde   : > { %v392_v30 = vadd.f32 %v391_v21, %v293_v25  ;;  %v405_v40 = vmax.f32 %v388_v32, 0.0 }
  0xdf   : > { %v393_v22 = vpop.f32.mrf.mxu0 }
  0xe0   : > { %v394_v28 = vadd.f32 %v393_v22, %v293_v25  ;;  %v406_v39 = vmax.f32 %v392_v30, 0.0 }
  0xe1   : > { %v397_v24 = vpop.f32.mrf.mxu0 }
  0xe2   : > { %v398_v26 = vadd.f32 %v397_v24, %v298_v20  ;;  %v407_v37 = vmax.f32 %v394_v28, 0.0 }
  0xe3   : > { %v399_v27 = vpop.f32.mrf.mxu0 }
  0xe4   : > { %v400_v29 = vadd.f32 %v399_v27, %v298_v20  ;;  %v408_v35 = vmax.f32 %v398_v26, 0.0 }
  0xe6   : > { %v409_v33 = vmax.f32 %v400_v29, 0.0 }
  0xe8   : > { %451 = vmatprep.subr.mxu1 %v409_v33 }
  0xe9   : > { %452 = vmatpush1.msra.mxu1 %v408_v35 }
  0xea   : > { %453 = vmatprep.subr.mxu1 %v407_v37 }
  0xeb   : > { %454 = vmatpush1.msra.mxu1 %v406_v39 }
  0xec   : > { %455 = vmatprep.subr.mxu1 %v405_v40 }
  0xed   : > { %456 = vmatpush1.msra.mxu1 %v404_v41 }
  0xee   : > { %457 = vmatprep.subr.mxu1 %v403_v42 }
  0xef   : > { %458 = vmatpush1.msra.mxu1 %v402_v43 }
  0xf0   : > { %608 = vmatmul.mubr.msk.f32.vlgmr.msra.gmra.mxu1 %vm420_vm1, %v268_v44 }
  0xf1   : > { %497 = vmatprep.mubr.f32.mxu1 %v666_v0 }
  0xf4   : > { %609 = vmatmul.mubr.msk.f32.gmra.mxu1 %vm420_vm1, %v269_v45 }
 0x1b0   : > { %v493_v47 = vpop.f32.mrf.mxu1 }
 0x1b1   : > { %v494_v48 = vadd.f32 %v493_v47, %v413_v46 }
 0x1b2   : > { %v495_v49 = vpop.f32.mrf.mxu1 }
 0x1b3   : > { %504 = vst [vmem:[%s262_s7] sm:$0xff] %v494_v48  ;;  %v496_v50 = vadd.f32 %v495_v49, %v413_v46 }
 0x1b4   : > { %v499_v52 = vpop.f32.mrf.mxu1 }
 0x1b5   : > { %505 = vst [vmem:[%s262_s7 + $0x8] sm:$0xff] %v496_v50  ;;  %v500_v53 = vadd.f32 %v499_v52, %v418_v51 }
 0x1b6   : > { %v501_v54 = vpop.f32.mrf.mxu1 }
 0x1b7   : > { %506 = vst [vmem:[%s262_s7 + $0x10] sm:$0xff] %v500_v53  ;;  %v502_v55 = vadd.f32 %v501_v54, %v418_v51 }
 0x1b9   : > { %507 = vst [vmem:[%s262_s7 + $0x18] sm:$0xff] %v502_v55 }
 0x1ba PF: > { %s15_s20 = sadd.s32 1, %s664_s20   ;;  %s790_s18 = smov %s660_s19 }
 0x1bb   : > { %p12_p5 = scmp.ge.s32.totalorder %s15_s20, 4   ;;  %s791_s19 = smov %s793_s21 }
 0x1bd   :  { %14 = sbr.rel (!%p12_p5) target bundleno = 2 (0x2), region = 70 }

</bundles_post_ra>
